<compile_context>
chip_gen: v5e
topology: v5e:2x2
jax: 0.10.0
libtpu: 0.0.40
codegen_flags: <defaults>
</compile_context>

<pallas_src>
from functools import partial

import jax
import jax.numpy as jnp
from jax.experimental import pallas as pl
from jax.experimental.pallas import tpu as pltpu


# ---------------------------------------------------------------------------
# Pallas kernel: one batch-block (TB batch elements) per grid step.
# ---------------------------------------------------------------------------
def _cross_attn_block_kernel(
    x_ref,          # (TB, N, C)
    ln1g_ref,       # (1, C)
    ln1b_ref,       # (1, C)
    wq_ref,         # (C, C)   pre-transposed
    wkv_ref,        # (C, 2C)  pre-transposed, columns = [Wk | Wv]
    wp_ref,         # (C, C)
    bp_ref,         # (1, C)
    ln2g_ref,       # (1, C)
    ln2b_ref,       # (1, C)
    w1_ref,         # (C, Hmlp)
    b1_ref,         # (1, Hmlp)
    w2_ref,         # (Hmlp, C)
    b2_ref,         # (1, C)
    seg_ref,        # (H, C) 0/1 head-selection mask: seg[h, c] = 1 iff c // hd == h
    o_ref,          # (TB, C)
    *,
    scale: float,
    mxu_dtype,
):
    xb = x_ref[...]                      # (TB, N, C) float32
    TB, N, C = xb.shape
    eps = 1e-5
    cast = lambda a: a.astype(mxu_dtype)   # bf16 MXU feeds (optional), f32 accumulate

    # ---- LayerNorm 1 over channels (f32 VPU/EUP math) ----
    mu = jnp.mean(xb, axis=-1, keepdims=True)
    var = jnp.mean((xb - mu) ** 2, axis=-1, keepdims=True)
    ln1 = (xb - mu) * jax.lax.rsqrt(var + eps) * ln1g_ref[...] + ln1b_ref[...]

    # ---- Projections: fused K/V over all tokens, Q only for token 0 ----
    kv = jnp.dot(cast(ln1.reshape(TB * N, C)), cast(wkv_ref[...]),
                 preferred_element_type=jnp.float32)            # (TB*N, 2C)
    kv3 = kv.reshape(TB, N, 2 * C)
    k3 = kv3[:, :, 0:C]                                         # (TB, N, C)
    v3 = kv3[:, :, C:2 * C]                                     # (TB, N, C)
    q0 = jnp.dot(cast(ln1[:, 0, :]), cast(wq_ref[...]),
                 preferred_element_type=jnp.float32)            # (TB, C)

    seg = seg_ref[...]                                          # (H, C)

    # ---- Per-head scores via one batched contraction (no per-head slicing) ----
    #   s[b,h,n] = sum_c (scale * q0[b,c] * seg[h,c]) * k[b,n,c]
    qseg = (q0 * scale)[:, None, :] * seg[None, :, :]           # (TB, H, C)
    s = jnp.einsum('bhc,bnc->bhn', cast(qseg), cast(k3),
                   preferred_element_type=jnp.float32)          # (TB, H, N)
    s = s - jnp.max(s, axis=-1, keepdims=True)
    p = jnp.exp(s)
    p = p * pl.reciprocal(jnp.sum(p, axis=-1, keepdims=True), approx=True)

    # ---- Weighted values per head, then head-select channels with the mask ----
    #   attn[b,c] = sum_n p[b, c//hd, n] * v[b, n, c]
    ph_v = jnp.einsum('bhn,bnc->bhc', cast(p), cast(v3),
                      preferred_element_type=jnp.float32)       # (TB, H, C)
    attn = jnp.sum(ph_v * seg[None, :, :], axis=1)              # (TB, C)

    # ---- Output projection + residual 1 (token-0 row of the raw input) ----
    proj = jnp.dot(cast(attn), cast(wp_ref[...]),
                   preferred_element_type=jnp.float32) + bp_ref[...]
    y1 = xb[:, 0, :] + proj                                     # (TB, C)

    # ---- LayerNorm 2 + MLP (exact-erf GELU) + residual 2 ----
    mu2 = jnp.mean(y1, axis=-1, keepdims=True)
    var2 = jnp.mean((y1 - mu2) ** 2, axis=-1, keepdims=True)
    ln2 = (y1 - mu2) * jax.lax.rsqrt(var2 + eps) * ln2g_ref[...] + ln2b_ref[...]
    h1 = jnp.dot(cast(ln2), cast(w1_ref[...]),
                 preferred_element_type=jnp.float32) + b1_ref[...]      # (TB, Hmlp)
    g = 0.5 * h1 * (1.0 + jax.lax.erf(h1 * 0.7071067811865476))
    mlp = jnp.dot(cast(g), cast(w2_ref[...]),
                  preferred_element_type=jnp.float32) + b2_ref[...]     # (TB, C)

    o_ref[...] = (y1 + mlp).astype(o_ref.dtype)


# ---------------------------------------------------------------------------
# Wrapper
# ---------------------------------------------------------------------------
def cross_attention_block(x, params, num_heads, *, batch_block=None, use_bf16_mxu=False):
    B, N, C = x.shape
    hd = C // num_heads
    scale = hd ** (-0.5)

    TB = B if batch_block is None else min(batch_block, B)
    assert B % TB == 0, "batch must be divisible by the batch block"

    # Fused KV weight (C, 2C) and the 0/1 head-selection mask (H, C).
    wkv = jnp.concatenate([params["wk_t"], params["wv_t"]], axis=1)
    seg = (jnp.arange(C)[None, :] // hd ==
           jnp.arange(num_heads)[:, None]).astype(jnp.float32)

    weights = (
        params["ln1_g"], params["ln1_b"],
        params["wq_t"], wkv,
        params["wp_t"], params["bp"],
        params["ln2_g"], params["ln2_b"],
        params["w1_t"], params["b1"],
        params["w2_t"], params["b2"],
        seg,
    )

    def full_spec(a):
        # Whole (grid-invariant) array resident per step.
        # TODO(synk): at production C, tile w1/w2 over a K grid axis (or
        # single-buffer them) so the weights fit v7x's 64 MiB VMEM.
        return pl.BlockSpec(a.shape, lambda i: (0,) * a.ndim)

    in_specs = [pl.BlockSpec((TB, N, C), lambda i: (i, 0, 0))]
    in_specs += [full_spec(w) for w in weights]

    kernel = partial(
        _cross_attn_block_kernel,
        scale=scale,
        mxu_dtype=jnp.bfloat16 if use_bf16_mxu else jnp.float32,
    )

    out2d = pl.pallas_call(
        kernel,
        out_shape=jax.ShapeDtypeStruct((B, C), jnp.float32),
        grid=(B // TB,),
        in_specs=in_specs,
        out_specs=pl.BlockSpec((TB, C), lambda i: (i, 0)),
        compiler_params=pltpu.CompilerParams(
            dimension_semantics=("parallel",),
            vmem_limit_bytes=32 * 1024 * 1024),
    )(x, *weights)

    return out2d.reshape(B, 1, C)


# ---------------------------------------------------------------------------
# Pure-JAX reference (mirrors the PyTorch forward exactly)
# ---------------------------------------------------------------------------
def ref_forward(x, p, num_heads):
    def ln(z, g, b):
        m = z.mean(-1, keepdims=True)
        v = ((z - m) ** 2).mean(-1, keepdims=True)
        return (z - m) / jnp.sqrt(v + 1e-5) * g + b

    B, N, C = x.shape
    hd = C // num_heads
    xn = ln(x, p["ln1_g"][0], p["ln1_b"][0])
    q = (xn[:, 0:1] @ p["wq_t"]).reshape(B, 1, num_heads, hd).transpose(0, 2, 1, 3)
    k = (xn @ p["wk_t"]).reshape(B, N, num_heads, hd).transpose(0, 2, 1, 3)
    v = (xn @ p["wv_t"]).reshape(B, N, num_heads, hd).transpose(0, 2, 1, 3)
    attn = jax.nn.softmax((q @ jnp.swapaxes(k, -2, -1)) * (hd ** -0.5), axis=-1)
    o = (attn @ v).transpose(0, 2, 1, 3).reshape(B, 1, C)
    o = o @ p["wp_t"] + p["bp"][0]
    y1 = x[:, 0:1] + o
    y2 = ln(y1, p["ln2_g"][0], p["ln2_b"][0])
    h = y2 @ p["w1_t"] + p["b1"][0]
    h = jax.nn.gelu(h, approximate=False)
    h = h @ p["w2_t"] + p["b2"][0]
    return y1 + h


# ---------------------------------------------------------------------------
# Main
# ---------------------------------------------------------------------------
if __name__ == "__main__":
    B, N, C = 2, 8, 32
    num_heads = 4
    mlp_ratio = 4.0
    hmlp = int(C * mlp_ratio)

    key = jax.random.PRNGKey(0)
    keys = jax.random.split(key, 10)

    # deterministic synthetic parameters (qkv_bias=False -> no q/k/v biases)
    params = {
        "ln1_g": jnp.ones((1, C), jnp.float32),
        "ln1_b": jnp.zeros((1, C), jnp.float32),
        "wq_t": 0.05 * jax.random.normal(keys[0], (C, C), jnp.float32),
        "wk_t": 0.05 * jax.random.normal(keys[1], (C, C), jnp.float32),
        "wv_t": 0.05 * jax.random.normal(keys[2], (C, C), jnp.float32),
        "wp_t": 0.05 * jax.random.normal(keys[3], (C, C), jnp.float32),
        "bp":   0.05 * jax.random.normal(keys[4], (1, C), jnp.float32),
        "ln2_g": jnp.ones((1, C), jnp.float32),
        "ln2_b": jnp.zeros((1, C), jnp.float32),
        "w1_t": 0.05 * jax.random.normal(keys[5], (C, hmlp), jnp.float32),
        "b1":   0.05 * jax.random.normal(keys[6], (1, hmlp), jnp.float32),
        "w2_t": 0.05 * jax.random.normal(keys[7], (hmlp, C), jnp.float32),
        "b2":   0.05 * jax.random.normal(keys[8], (1, C), jnp.float32),
    }

    x = jax.random.normal(keys[9], (B, N, C), jnp.float32)

    out = cross_attention_block(x, params, num_heads)
    out = jax.block_until_ready(out)

    ref = ref_forward(x, params, num_heads)
    assert out.shape == (B, 1, C)
    # Tolerance leaves headroom for the approximate EUP reciprocal in the softmax.
    assert jnp.allclose(out, ref, atol=2e-3, rtol=2e-3), (
        f"max err {jnp.max(jnp.abs(out - ref))}")

    print("KERNEL_OK")
</pallas_src>

<mosaic_0001>
module attributes {stable_mosaic.version = 11 : i64} {
  func.func @_cross_attn_block_kernel(%arg0: i32, %arg1: memref<2x8x32xf32, #tpu.memory_space<vmem>>, %arg2: memref<1x32xf32, #tpu.memory_space<vmem>>, %arg3: memref<1x32xf32, #tpu.memory_space<vmem>>, %arg4: memref<32x32xf32, #tpu.memory_space<vmem>>, %arg5: memref<32x64xf32, #tpu.memory_space<vmem>>, %arg6: memref<32x32xf32, #tpu.memory_space<vmem>>, %arg7: memref<1x32xf32, #tpu.memory_space<vmem>>, %arg8: memref<1x32xf32, #tpu.memory_space<vmem>>, %arg9: memref<1x32xf32, #tpu.memory_space<vmem>>, %arg10: memref<32x128xf32, #tpu.memory_space<vmem>>, %arg11: memref<1x128xf32, #tpu.memory_space<vmem>>, %arg12: memref<128x32xf32, #tpu.memory_space<vmem>>, %arg13: memref<1x32xf32, #tpu.memory_space<vmem>>, %arg14: memref<4x32xf32, #tpu.memory_space<vmem>>, %arg15: memref<2x32xf32, #tpu.memory_space<vmem>>) attributes {dimension_semantics = [#tpu.dimension_semantics<parallel>], iteration_bounds = array<i64: 1>, scalar_prefetch = 0 : i64, scratch_operands = 0 : i64, tpu.core_type = #tpu.core_type<tc>, window_params = [{transform_indices = @transform_0, window_bounds = array<i64: 2, 8, 32>}, {pipeline_mode = #tpu.pipeline_mode<synchronous>, transform_indices = @transform_1, window_bounds = array<i64: 1, 32>}, {pipeline_mode = #tpu.pipeline_mode<synchronous>, transform_indices = @transform_2, window_bounds = array<i64: 1, 32>}, {pipeline_mode = #tpu.pipeline_mode<synchronous>, transform_indices = @transform_3, window_bounds = array<i64: 32, 32>}, {pipeline_mode = #tpu.pipeline_mode<synchronous>, transform_indices = @transform_4, window_bounds = array<i64: 32, 64>}, {pipeline_mode = #tpu.pipeline_mode<synchronous>, transform_indices = @transform_5, window_bounds = array<i64: 32, 32>}, {pipeline_mode = #tpu.pipeline_mode<synchronous>, transform_indices = @transform_6, window_bounds = array<i64: 1, 32>}, {pipeline_mode = #tpu.pipeline_mode<synchronous>, transform_indices = @transform_7, window_bounds = array<i64: 1, 32>}, {pipeline_mode = #tpu.pipeline_mode<synchronous>, transform_indices = @transform_8, window_bounds = array<i64: 1, 32>}, {pipeline_mode = #tpu.pipeline_mode<synchronous>, transform_indices = @transform_9, window_bounds = array<i64: 32, 128>}, {pipeline_mode = #tpu.pipeline_mode<synchronous>, transform_indices = @transform_10, window_bounds = array<i64: 1, 128>}, {pipeline_mode = #tpu.pipeline_mode<synchronous>, transform_indices = @transform_11, window_bounds = array<i64: 128, 32>}, {pipeline_mode = #tpu.pipeline_mode<synchronous>, transform_indices = @transform_12, window_bounds = array<i64: 1, 32>}, {pipeline_mode = #tpu.pipeline_mode<synchronous>, transform_indices = @transform_13, window_bounds = array<i64: 4, 32>}, {transform_indices = @transform_14, window_bounds = array<i64: 2, 32>}]} {
    %c0 = arith.constant 0 : index
    %c0_0 = arith.constant 0 : index
    %c0_1 = arith.constant 0 : index
    %0 = vector.load %arg1[%c0, %c0_0, %c0_1] : memref<2x8x32xf32, #tpu.memory_space<vmem>>, vector<2x8x32xf32>
    %cst = arith.constant dense<0.000000e+00> : vector<2x8xf32>
    %1 = vector.multi_reduction <add>, %0, %cst [2] : vector<2x8x32xf32> to vector<2x8xf32>
    %2 = vector.shape_cast %1 : vector<2x8xf32> to vector<2x8x1xf32>
    %cst_2 = arith.constant 3.200000e+01 : f32
    %3 = vector.broadcast %cst_2 : f32 to vector<2x8x1xf32>
    %4 = arith.divf %2, %3 : vector<2x8x1xf32>
    %5 = vector.broadcast %4 : vector<2x8x1xf32> to vector<2x8x32xf32>
    %6 = arith.subf %0, %5 : vector<2x8x32xf32>
    %7 = arith.mulf %6, %6 : vector<2x8x32xf32>
    %cst_3 = arith.constant dense<0.000000e+00> : vector<2x8xf32>
    %8 = vector.multi_reduction <add>, %7, %cst_3 [2] : vector<2x8x32xf32> to vector<2x8xf32>
    %9 = vector.shape_cast %8 : vector<2x8xf32> to vector<2x8x1xf32>
    %cst_4 = arith.constant 3.200000e+01 : f32
    %10 = vector.broadcast %cst_4 : f32 to vector<2x8x1xf32>
    %11 = arith.divf %9, %10 : vector<2x8x1xf32>
    %12 = vector.broadcast %4 : vector<2x8x1xf32> to vector<2x8x32xf32>
    %13 = arith.subf %0, %12 : vector<2x8x32xf32>
    %cst_5 = arith.constant 9.99999974E-6 : f32
    %14 = vector.broadcast %cst_5 : f32 to vector<2x8x1xf32>
    %15 = arith.addf %11, %14 : vector<2x8x1xf32>
    %16 = math.rsqrt %15 : vector<2x8x1xf32>
    %17 = vector.broadcast %16 : vector<2x8x1xf32> to vector<2x8x32xf32>
    %18 = arith.mulf %13, %17 : vector<2x8x32xf32>
    %c0_6 = arith.constant 0 : index
    %c0_7 = arith.constant 0 : index
    %19 = vector.load %arg2[%c0_6, %c0_7] : memref<1x32xf32, #tpu.memory_space<vmem>>, vector<1x32xf32>
    %20 = vector.shape_cast %19 : vector<1x32xf32> to vector<1x1x32xf32>
    %21 = vector.broadcast %20 : vector<1x1x32xf32> to vector<2x8x32xf32>
    %22 = arith.mulf %18, %21 : vector<2x8x32xf32>
    %c0_8 = arith.constant 0 : index
    %c0_9 = arith.constant 0 : index
    %23 = vector.load %arg3[%c0_8, %c0_9] : memref<1x32xf32, #tpu.memory_space<vmem>>, vector<1x32xf32>
    %24 = vector.shape_cast %23 : vector<1x32xf32> to vector<1x1x32xf32>
    %25 = vector.broadcast %24 : vector<1x1x32xf32> to vector<2x8x32xf32>
    %26 = arith.addf %22, %25 : vector<2x8x32xf32>
    %27 = vector.shape_cast %26 : vector<2x8x32xf32> to vector<16x32xf32>
    %c0_10 = arith.constant 0 : index
    %c0_11 = arith.constant 0 : index
    %28 = vector.load %arg5[%c0_10, %c0_11] : memref<32x64xf32, #tpu.memory_space<vmem>>, vector<32x64xf32>
    %cst_12 = arith.constant dense<0.000000e+00> : vector<16x64xf32>
    %29 = tpu.matmul %27, %28, %cst_12 {dimension_numbers = #tpu.dot_dimension_numbers<[1], [0], [0], [1], [0, 0, 1, 1], [], []>} : vector<16x32xf32>, vector<32x64xf32>, vector<16x64xf32> -> vector<16x64xf32>
    %30 = vector.shape_cast %29 : vector<16x64xf32> to vector<2x8x64xf32>
    %31 = vector.extract_strided_slice %30 {offsets = [0, 0, 0], sizes = [2, 8, 32], strides = [1, 1, 1]} : vector<2x8x64xf32> to vector<2x8x32xf32>
    %32 = vector.extract_strided_slice %30 {offsets = [0, 0, 32], sizes = [2, 8, 32], strides = [1, 1, 1]} : vector<2x8x64xf32> to vector<2x8x32xf32>
    %33 = vector.extract_strided_slice %26 {offsets = [0, 0, 0], sizes = [2, 1, 32], strides = [1, 1, 1]} : vector<2x8x32xf32> to vector<2x1x32xf32>
    %34 = vector.shape_cast %33 : vector<2x1x32xf32> to vector<2x32xf32>
    %c0_13 = arith.constant 0 : index
    %c0_14 = arith.constant 0 : index
    %35 = vector.load %arg4[%c0_13, %c0_14] : memref<32x32xf32, #tpu.memory_space<vmem>>, vector<32x32xf32>
    %cst_15 = arith.constant dense<0.000000e+00> : vector<2x32xf32>
    %36 = tpu.matmul %34, %35, %cst_15 {dimension_numbers = #tpu.dot_dimension_numbers<[1], [0], [0], [1], [0, 0, 1, 1], [], []>} : vector<2x32xf32>, vector<32x32xf32>, vector<2x32xf32> -> vector<2x32xf32>
    %c0_16 = arith.constant 0 : index
    %c0_17 = arith.constant 0 : index
    %37 = vector.load %arg14[%c0_16, %c0_17] : memref<4x32xf32, #tpu.memory_space<vmem>>, vector<4x32xf32>
    %cst_18 = arith.constant 0.353553385 : f32
    %38 = vector.broadcast %cst_18 : f32 to vector<2x32xf32>
    %39 = arith.mulf %36, %38 : vector<2x32xf32>
    %40 = vector.shape_cast %39 : vector<2x32xf32> to vector<2x1x32xf32>
    %41 = vector.shape_cast %37 : vector<4x32xf32> to vector<1x4x32xf32>
    %42 = vector.broadcast %40 : vector<2x1x32xf32> to vector<2x4x32xf32>
    %43 = vector.broadcast %41 : vector<1x4x32xf32> to vector<2x4x32xf32>
    %44 = arith.mulf %42, %43 : vector<2x4x32xf32>
    "tpu.trace_start"() <{level = 10 : i32, message = "bhc,bnc->bhn"}> : () -> ()
    %cst_19 = arith.constant dense<0.000000e+00> : vector<2x4x8xf32>
    %45 = tpu.matmul %44, %31, %cst_19 {dimension_numbers = #tpu.dot_dimension_numbers<[2], [2], [1], [1], [0, 0, 0, 1, 1, 1], [0], [0]>} : vector<2x4x32xf32>, vector<2x8x32xf32>, vector<2x4x8xf32> -> vector<2x4x8xf32>
    "tpu.trace_stop"() : () -> ()
    %cst_20 = arith.constant dense<0xFF800000> : vector<2x4xf32>
    %46 = vector.multi_reduction <maximumf>, %45, %cst_20 [2] : vector<2x4x8xf32> to vector<2x4xf32>
    %47 = vector.shape_cast %46 : vector<2x4xf32> to vector<2x4x1xf32>
    %48 = vector.broadcast %47 : vector<2x4x1xf32> to vector<2x4x8xf32>
    %49 = arith.subf %45, %48 : vector<2x4x8xf32>
    %50 = math.exp %49 : vector<2x4x8xf32>
    %cst_21 = arith.constant dense<0.000000e+00> : vector<2x4xf32>
    %51 = vector.multi_reduction <add>, %50, %cst_21 [2] : vector<2x4x8xf32> to vector<2x4xf32>
    %52 = vector.shape_cast %51 : vector<2x4xf32> to vector<2x4x1xf32>
    %53 = tpu.reciprocal %52 {approx = true} : vector<2x4x1xf32> -> vector<2x4x1xf32>
    %54 = vector.broadcast %53 : vector<2x4x1xf32> to vector<2x4x8xf32>
    %55 = arith.mulf %50, %54 : vector<2x4x8xf32>
    "tpu.trace_start"() <{level = 10 : i32, message = "bhn,bnc->bhc"}> : () -> ()
    %cst_22 = arith.constant dense<0.000000e+00> : vector<2x4x32xf32>
    %56 = tpu.matmul %55, %32, %cst_22 {dimension_numbers = #tpu.dot_dimension_numbers<[2], [1], [1], [2], [0, 0, 0, 1, 1, 2], [0], [0]>} : vector<2x4x8xf32>, vector<2x8x32xf32>, vector<2x4x32xf32> -> vector<2x4x32xf32>
    "tpu.trace_stop"() : () -> ()
    %57 = vector.shape_cast %37 : vector<4x32xf32> to vector<1x4x32xf32>
    %58 = vector.broadcast %57 : vector<1x4x32xf32> to vector<2x4x32xf32>
    %59 = arith.mulf %56, %58 : vector<2x4x32xf32>
    %cst_23 = arith.constant dense<0.000000e+00> : vector<2x32xf32>
    %60 = vector.multi_reduction <add>, %59, %cst_23 [1] : vector<2x4x32xf32> to vector<2x32xf32>
    %c0_24 = arith.constant 0 : index
    %c0_25 = arith.constant 0 : index
    %61 = vector.load %arg6[%c0_24, %c0_25] : memref<32x32xf32, #tpu.memory_space<vmem>>, vector<32x32xf32>
    %cst_26 = arith.constant dense<0.000000e+00> : vector<2x32xf32>
    %62 = tpu.matmul %60, %61, %cst_26 {dimension_numbers = #tpu.dot_dimension_numbers<[1], [0], [0], [1], [0, 0, 1, 1], [], []>} : vector<2x32xf32>, vector<32x32xf32>, vector<2x32xf32> -> vector<2x32xf32>
    %c0_27 = arith.constant 0 : index
    %c0_28 = arith.constant 0 : index
    %63 = vector.load %arg7[%c0_27, %c0_28] : memref<1x32xf32, #tpu.memory_space<vmem>>, vector<1x32xf32>
    %64 = vector.broadcast %63 : vector<1x32xf32> to vector<2x32xf32>
    %65 = arith.addf %62, %64 : vector<2x32xf32>
    %66 = vector.extract_strided_slice %0 {offsets = [0, 0, 0], sizes = [2, 1, 32], strides = [1, 1, 1]} : vector<2x8x32xf32> to vector<2x1x32xf32>
    %67 = vector.shape_cast %66 : vector<2x1x32xf32> to vector<2x32xf32>
    %68 = arith.addf %67, %65 : vector<2x32xf32>
    %cst_29 = arith.constant dense<0.000000e+00> : vector<2xf32>
    %69 = vector.multi_reduction <add>, %68, %cst_29 [1] : vector<2x32xf32> to vector<2xf32>
    %70 = vector.shape_cast %69 : vector<2xf32> to vector<2x1xf32>
    %cst_30 = arith.constant 3.200000e+01 : f32
    %71 = vector.broadcast %cst_30 : f32 to vector<2x1xf32>
    %72 = arith.divf %70, %71 : vector<2x1xf32>
    %73 = vector.broadcast %72 : vector<2x1xf32> to vector<2x32xf32>
    %74 = arith.subf %68, %73 : vector<2x32xf32>
    %75 = arith.mulf %74, %74 : vector<2x32xf32>
    %cst_31 = arith.constant dense<0.000000e+00> : vector<2xf32>
    %76 = vector.multi_reduction <add>, %75, %cst_31 [1] : vector<2x32xf32> to vector<2xf32>
    %77 = vector.shape_cast %76 : vector<2xf32> to vector<2x1xf32>
    %cst_32 = arith.constant 3.200000e+01 : f32
    %78 = vector.broadcast %cst_32 : f32 to vector<2x1xf32>
    %79 = arith.divf %77, %78 : vector<2x1xf32>
    %80 = vector.broadcast %72 : vector<2x1xf32> to vector<2x32xf32>
    %81 = arith.subf %68, %80 : vector<2x32xf32>
    %cst_33 = arith.constant 9.99999974E-6 : f32
    %82 = vector.broadcast %cst_33 : f32 to vector<2x1xf32>
    %83 = arith.addf %79, %82 : vector<2x1xf32>
    %84 = math.rsqrt %83 : vector<2x1xf32>
    %85 = vector.broadcast %84 : vector<2x1xf32> to vector<2x32xf32>
    %86 = arith.mulf %81, %85 : vector<2x32xf32>
    %c0_34 = arith.constant 0 : index
    %c0_35 = arith.constant 0 : index
    %87 = vector.load %arg8[%c0_34, %c0_35] : memref<1x32xf32, #tpu.memory_space<vmem>>, vector<1x32xf32>
    %88 = vector.broadcast %87 : vector<1x32xf32> to vector<2x32xf32>
    %89 = arith.mulf %86, %88 : vector<2x32xf32>
    %c0_36 = arith.constant 0 : index
    %c0_37 = arith.constant 0 : index
    %90 = vector.load %arg9[%c0_36, %c0_37] : memref<1x32xf32, #tpu.memory_space<vmem>>, vector<1x32xf32>
    %91 = vector.broadcast %90 : vector<1x32xf32> to vector<2x32xf32>
    %92 = arith.addf %89, %91 : vector<2x32xf32>
    %c0_38 = arith.constant 0 : index
    %c0_39 = arith.constant 0 : index
    %93 = vector.load %arg10[%c0_38, %c0_39] : memref<32x128xf32, #tpu.memory_space<vmem>>, vector<32x128xf32>
    %cst_40 = arith.constant dense<0.000000e+00> : vector<2x128xf32>
    %94 = tpu.matmul %92, %93, %cst_40 {dimension_numbers = #tpu.dot_dimension_numbers<[1], [0], [0], [1], [0, 0, 1, 1], [], []>} : vector<2x32xf32>, vector<32x128xf32>, vector<2x128xf32> -> vector<2x128xf32>
    %c0_41 = arith.constant 0 : index
    %c0_42 = arith.constant 0 : index
    %95 = vector.load %arg11[%c0_41, %c0_42] : memref<1x128xf32, #tpu.memory_space<vmem>>, vector<1x128xf32>
    %96 = vector.broadcast %95 : vector<1x128xf32> to vector<2x128xf32>
    %97 = arith.addf %94, %96 : vector<2x128xf32>
    %cst_43 = arith.constant 5.000000e-01 : f32
    %98 = vector.broadcast %cst_43 : f32 to vector<2x128xf32>
    %99 = arith.mulf %98, %97 : vector<2x128xf32>
    %cst_44 = arith.constant 0.707106769 : f32
    %100 = vector.broadcast %cst_44 : f32 to vector<2x128xf32>
    %101 = arith.mulf %97, %100 : vector<2x128xf32>
    %102 = math.erf %101 : vector<2x128xf32>
    %cst_45 = arith.constant 1.000000e+00 : f32
    %103 = vector.broadcast %cst_45 : f32 to vector<2x128xf32>
    %104 = arith.addf %103, %102 : vector<2x128xf32>
    %105 = arith.mulf %99, %104 : vector<2x128xf32>
    %c0_46 = arith.constant 0 : index
    %c0_47 = arith.constant 0 : index
    %106 = vector.load %arg12[%c0_46, %c0_47] : memref<128x32xf32, #tpu.memory_space<vmem>>, vector<128x32xf32>
    %cst_48 = arith.constant dense<0.000000e+00> : vector<2x32xf32>
    %107 = tpu.matmul %105, %106, %cst_48 {dimension_numbers = #tpu.dot_dimension_numbers<[1], [0], [0], [1], [0, 0, 1, 1], [], []>} : vector<2x128xf32>, vector<128x32xf32>, vector<2x32xf32> -> vector<2x32xf32>
    %c0_49 = arith.constant 0 : index
    %c0_50 = arith.constant 0 : index
    %108 = vector.load %arg13[%c0_49, %c0_50] : memref<1x32xf32, #tpu.memory_space<vmem>>, vector<1x32xf32>
    %109 = vector.broadcast %108 : vector<1x32xf32> to vector<2x32xf32>
    %110 = arith.addf %107, %109 : vector<2x32xf32>
    %111 = arith.addf %68, %110 : vector<2x32xf32>
    %c0_51 = arith.constant 0 : index
    %c0_52 = arith.constant 0 : index
    %112 = vector.load %arg15[%c0_51, %c0_52] : memref<2x32xf32, #tpu.memory_space<vmem>>, vector<2x32xf32>
    tpu.vector_store %arg15[%c0_51, %c0_52], %111 {strides = array<i32>} : memref<2x32xf32, #tpu.memory_space<vmem>>, vector<2x32xf32>,
    return
  }
  func.func @transform_0(%arg0: i32) -> (i32, i32, i32) {
    %c0_i32 = arith.constant 0 : i32
    %c0_i32_0 = arith.constant 0 : i32
    %c0_i32_1 = arith.constant 0 : i32
    return %arg0, %c0_i32, %c0_i32_0 : i32, i32, i32
  }
  func.func @transform_1(%arg0: i32) -> (i32, i32) {
    %c0_i32 = arith.constant 0 : i32
    %c0_i32_0 = arith.constant 0 : i32
    %c0_i32_1 = arith.constant 0 : i32
    return %c0_i32, %c0_i32_0 : i32, i32
  }
  func.func @transform_2(%arg0: i32) -> (i32, i32) {
    %c0_i32 = arith.constant 0 : i32
    %c0_i32_0 = arith.constant 0 : i32
    %c0_i32_1 = arith.constant 0 : i32
    return %c0_i32, %c0_i32_0 : i32, i32
  }
  func.func @transform_3(%arg0: i32) -> (i32, i32) {
    %c0_i32 = arith.constant 0 : i32
    %c0_i32_0 = arith.constant 0 : i32
    %c0_i32_1 = arith.constant 0 : i32
    return %c0_i32, %c0_i32_0 : i32, i32
  }
  func.func @transform_4(%arg0: i32) -> (i32, i32) {
    %c0_i32 = arith.constant 0 : i32
    %c0_i32_0 = arith.constant 0 : i32
    %c0_i32_1 = arith.constant 0 : i32
    return %c0_i32, %c0_i32_0 : i32, i32
  }
  func.func @transform_5(%arg0: i32) -> (i32, i32) {
    %c0_i32 = arith.constant 0 : i32
    %c0_i32_0 = arith.constant 0 : i32
    %c0_i32_1 = arith.constant 0 : i32
    return %c0_i32, %c0_i32_0 : i32, i32
  }
  func.func @transform_6(%arg0: i32) -> (i32, i32) {
    %c0_i32 = arith.constant 0 : i32
    %c0_i32_0 = arith.constant 0 : i32
    %c0_i32_1 = arith.constant 0 : i32
    return %c0_i32, %c0_i32_0 : i32, i32
  }
  func.func @transform_7(%arg0: i32) -> (i32, i32) {
    %c0_i32 = arith.constant 0 : i32
    %c0_i32_0 = arith.constant 0 : i32
    %c0_i32_1 = arith.constant 0 : i32
    return %c0_i32, %c0_i32_0 : i32, i32
  }
  func.func @transform_8(%arg0: i32) -> (i32, i32) {
    %c0_i32 = arith.constant 0 : i32
    %c0_i32_0 = arith.constant 0 : i32
    %c0_i32_1 = arith.constant 0 : i32
    return %c0_i32, %c0_i32_0 : i32, i32
  }
  func.func @transform_9(%arg0: i32) -> (i32, i32) {
    %c0_i32 = arith.constant 0 : i32
    %c0_i32_0 = arith.constant 0 : i32
    %c0_i32_1 = arith.constant 0 : i32
    return %c0_i32, %c0_i32_0 : i32, i32
  }
  func.func @transform_10(%arg0: i32) -> (i32, i32) {
    %c0_i32 = arith.constant 0 : i32
    %c0_i32_0 = arith.constant 0 : i32
    %c0_i32_1 = arith.constant 0 : i32
    return %c0_i32, %c0_i32_0 : i32, i32
  }
  func.func @transform_11(%arg0: i32) -> (i32, i32) {
    %c0_i32 = arith.constant 0 : i32
    %c0_i32_0 = arith.constant 0 : i32
    %c0_i32_1 = arith.constant 0 : i32
    return %c0_i32, %c0_i32_0 : i32, i32
  }
  func.func @transform_12(%arg0: i32) -> (i32, i32) {
    %c0_i32 = arith.constant 0 : i32
    %c0_i32_0 = arith.constant 0 : i32
    %c0_i32_1 = arith.constant 0 : i32
    return %c0_i32, %c0_i32_0 : i32, i32
  }
  func.func @transform_13(%arg0: i32) -> (i32, i32) {
    %c0_i32 = arith.constant 0 : i32
    %c0_i32_0 = arith.constant 0 : i32
    %c0_i32_1 = arith.constant 0 : i32
    return %c0_i32, %c0_i32_0 : i32, i32
  }
  func.func @transform_14(%arg0: i32) -> (i32, i32) {
    %c0_i32 = arith.constant 0 : i32
    %c0_i32_0 = arith.constant 0 : i32
    return %arg0, %c0_i32 : i32, i32
  }
}

</mosaic_0001>

<bundles_post_ra>
// kernel: tpu_custom_call.1
= control target key start
LH: loop header
LB: loop body
LE: loop exit
PB: predicated region body
PF: predicated region fallthrough
CT: control target
= control target key end

     0   :  { %vm50_vm0 = vcmask 261120   ;;  %s910_s0 = inlined_call_operand.vmem [shape: f32[2,8,32], index: 0, kind: input, shape index: {}]   ;;  %s911_s1 = inlined_call_operand.vmem [shape: f32[1,32], index: 1, kind: input, shape index: {}]   ;;  %s912_s2 = inlined_call_operand.vmem [shape: f32[1,32], index: 2, kind: input, shape index: {}]   ;;  %s913_s3 = inlined_call_operand.vmem [shape: f32[32,32], index: 3, kind: input, shape index: {}]   ;;  %s914_s4 = inlined_call_operand.vmem [shape: f32[32,64], index: 4, kind: input, shape index: {}]   ;;  %s915_s5 = inlined_call_operand.vmem [shape: f32[32,32], index: 5, kind: input, shape index: {}]   ;;  %s916_s6 = inlined_call_operand.vmem [shape: f32[1,32], index: 6, kind: input, shape index: {}]   ;;  %s917_s7 = inlined_call_operand.vmem [shape: f32[1,32], index: 7, kind: input, shape index: {}]   ;;  %s918_s8 = inlined_call_operand.vmem [shape: f32[1,32], index: 8, kind: input, shape index: {}]   ;;  %s919_s9 = inlined_call_operand.vmem [shape: f32[32,128], index: 9, kind: input, shape index: {}]   ;;  %s920_s10 = inlined_call_operand.vmem [shape: f32[1,128], index: 10, kind: input, shape index: {}]   ;;  %s921_s11 = inlined_call_operand.vmem [shape: f32[128,32], index: 11, kind: input, shape index: {}]   ;;  %s922_s12 = inlined_call_operand.vmem [shape: f32[1,32], index: 12, kind: input, shape index: {}]   ;;  %s923_s13 = inlined_call_operand.vmem [shape: f32[4,32], index: 13, kind: input, shape index: {}]   ;;  %s924_s14 = inlined_call_operand.hbm [shape: f32[2,32], index: 14, kind: output, shape index: {}]  }
   0x1   :  { %v724_v0 = vld [vmem:[%s910_s0] sm:$0xff] }
   0x2   :  { %v51_v1 = vsel %vm50_vm0, %v724_v0, 0.0 }
   0x3   :  { %52 = vadd.xlane.f32.xlu0 %v51_v1 }
   0x4   :  { %19 = vsyncpa [#allocation3], 0  ;;  %v731_v2 = vld [vmem:[%s910_s0 + $0x8] sm:$0xff]  ;;  %v643_v4 = vmov 32.0   ;;  %v117_v21 = vld [vmem:[%s914_s4 + $0x18] sm:$0xff]  ;;  %vm152_vm8 = vcmask 1041409  }
   0x5   :  { %v54_v3 = vsel %vm50_vm0, %v731_v2, 0.0  ;;  %599 = vrcp.f32 %v643_v4  ;;  %136 = vmatpush.msra.mxu3 %v117_v21  ;;  %v116_v22 = vld [vmem:[%s914_s4 + $0x10] sm:$0xff]  ;;  %v115_v23 = vld [vmem:[%s914_s4 + $0x8] sm:$0xff]  ;;  %v114_v24 = vld [vmem:[%s914_s4] sm:$0xff]  ;;  %vm238_vm9 = vcmask 60416   ;;  %vm264_vm10 = vcmask 64512  }
   0x6   :  { %v150_v25 = vld [vmem:[%s913_s3 + $0x18] sm:$0xff]  ;;  %v149_v26 = vld [vmem:[%s913_s3 + $0x10] sm:$0xff]  ;;  %v148_v30 = vld [vmem:[%s913_s3 + $0x8] sm:$0xff]  ;;  %vm316_vm11 = vcmask 257024   ;;  %vm375_vm12 = vcmask 254976   ;;  %s645_s19 = smov [#allocation2]  }
   0x7   :  { %137 = vmatpush.msra.mxu3 %v116_v22  ;;  %168 = vmatpush.msra.mxu1 %v150_v25  ;;  %v147_v31 = vld [vmem:[%s913_s3] sm:$0xff]  ;;  %s561_s20 = sshll.u32 %s645_s19, 4  ;;  %s563_s23 = sshll.u32 %s924_s14, 4  ;;  %s562_s20 = int_to_ptr.vmem [resolvable:$true] %s561_s20  ;;  %s564_s23 = int_to_ptr.hbm [resolvable:$true] %s563_s23 }
   0x8   :  { %v592_v43 = vld [vmem:[%s911_s1] ss:$0 sm:$0xff] }
   0x9   :  { %138 = vmatpush.msra.mxu3 %v115_v23  ;;  %169 = vmatpush.msra.mxu1 %v149_v26  ;;  %v593_v47 = vld [vmem:[%s912_s2] ss:$0 sm:$0xff] }
   0xa   :  { %v783_v62 = vld [vmem:[%s923_s13] sm:$0xf]  ;;  %s644_s13 = smov 96  }
   0xb   :  { %55 = vadd.xlane.f32.xlu0 %v54_v3  ;;  %v600_v5 = vpop.eup %599  ;;  %139 = vmatpush.msra.mxu3 %v114_v24 }
   0xc   :  { %v58_v6 = vmul.f32 32.0, %v600_v5  ;;  %vm62_vm1 = vweird.f32 %v600_v5  ;;  %170 = vmatpush.msra.mxu1 %v148_v30 }
   0xe   :  { %v59_v7 = vsub.f32 1.0, %v58_v6  ;;  %171 = vmatpush.msra.mxu1 %v147_v31 }
  0x10   :  { %v60_v8 = vmul.f32 %v600_v5, %v59_v7 }
  0x12   :  { %v61_v9 = vadd.f32 %v600_v5, %v60_v8 }
  0x14   :  { %v735_v10 = vsel %vm62_vm1, %v600_v5, %v61_v9 }
  0x76   :  { %v53_v11 = vpop.xlane.xlu0 %52 }
  0x77   :  { %v64_v12 = vmul.f32 %v735_v10, %v53_v11 }
  0x79   :  { %v66_v13 = vsub.f32 %v724_v0, %v64_v12 }
  0x7b   :  { %v68_v14 = vmul.f32 %v66_v13, %v66_v13 }
  0x7d   :  { %v70_v15 = vsel %vm50_vm0, %v68_v14, 0.0 }
  0x7e   :  { %71 = vadd.xlane.f32.xlu1 %v70_v15  ;;  %v56_v16 = vpop.xlane.xlu0 %55 }
  0x7f   :  { %v65_v17 = vmul.f32 %v735_v10, %v56_v16 }
  0x81   :  { %v67_v18 = vsub.f32 %v731_v2, %v65_v17 }
  0x83   :  { %v69_v19 = vmul.f32 %v67_v18, %v67_v18 }
  0x85   :  { %v73_v20 = vsel %vm50_vm0, %v69_v19, 0.0 }
  0x86   :  { %74 = vadd.xlane.f32.xlu1 %v73_v20 }
  0xf1   :  { %v72_v27 = vpop.xlane.xlu1 %71 }
  0xf2   :  { %v76_v28 = vmul.f32 %v72_v27, %v735_v10 }
  0xf4   :  { %v78_v29 = vadd.f32 1e-05, %v76_v28 }
  0xf6   :  { %601 = vrsqrt.f32 %v78_v29  ;;  %vm86_vm3 = vweird.f32 %v78_v29 }
  0xf9   :  { %v75_v32 = vpop.xlane.xlu1 %74 }
  0xfa   :  { %v77_v33 = vmul.f32 %v75_v32, %v735_v10  ;;  %v334_v32 = vld [vmem:[%s915_s5 + $0x18] sm:$0xff] }
  0xfb   :  { %356 = vmatpush.msrb.mxu1 %v334_v32 }
  0xfc   :  { %v602_v34 = vpop.eup %601  ;;  %v79_v35 = vadd.f32 1e-05, %v77_v33  ;;  %v333_v33 = vld [vmem:[%s915_s5 + $0x10] sm:$0xff] }
  0xfd   :  { %v81_v36 = vmul.f32 %v602_v34, %v78_v29  ;;  %vm87_vm2 = vweird.f32 %v602_v34  ;;  %357 = vmatpush.msrb.mxu1 %v333_v33 }
  0xfe   :  { %603 = vrsqrt.f32 %v79_v35  ;;  %vm88_vm4 = vmor %vm86_vm3, %vm87_vm2  ;;  %vm96_vm6 = vweird.f32 %v79_v35 }
  0xff   :  { %v82_v37 = vmul.f32 %v602_v34, %v81_v36 }
 0x101   :  { %v83_v38 = vmul.f32 0.5, %v82_v37 }
 0x103   :  { %v84_v39 = vsub.f32 1.5, %v83_v38 }
 0x104   :  { %v604_v40 = vpop.eup %603 }
 0x105   :  { %v85_v41 = vmul.f32 %v602_v34, %v84_v39  ;;  %v91_v42 = vmul.f32 %v604_v40, %v79_v35  ;;  %vm97_vm5 = vweird.f32 %v604_v40  ;;  %v331_v35 = vld [vmem:[%s915_s5] sm:$0xff] }
 0x106   :  { %vm98_vm7 = vmor %vm96_vm6, %vm97_vm5 }
 0x107   :  { %v89_v44 = vsel %vm88_vm4, %v602_v34, %v85_v41  ;;  %v92_v45 = vmul.f32 %v604_v40, %v91_v42  ;;  %v332_v34 = vld [vmem:[%s915_s5 + $0x8] sm:$0xff] }
 0x108   :  { %v100_v46 = vmul.f32 %v89_v44, %v66_v13  ;;  %358 = vmatpush.msrb.mxu1 %v332_v34 }
 0x109   :  { %v93_v48 = vmul.f32 0.5, %v92_v45 }
 0x10a   :  { %v106_v49 = vmul.f32 %v592_v43, %v100_v46  ;;  %359 = vmatpush.msrb.mxu1 %v331_v35  ;;  %v519_v35 = vld [vmem:[%s921_s11 + $0x78] sm:$0xff] }
 0x10b   :  { %v94_v50 = vsub.f32 1.5, %v93_v48  ;;  %524 = vmatpush.msra.mxu0 %v519_v35 }
 0x10c   :  { %v112_v51 = vadd.f32 %v593_v47, %v106_v49 }
 0x10d   :  { %v95_v52 = vmul.f32 %v604_v40, %v94_v50 }
 0x10e   :  { %572 = vmatmul.msk.f32.vlgmr.msra.gmra.mxu3 %vm50_vm0, %v112_v51 }
 0x10f   :  { %v99_v53 = vsel %vm98_vm7, %v604_v40, %v95_v52 }
 0x110   :  { %v101_v54 = vmul.f32 %v99_v53, %v67_v18 }
 0x112   :  { %v107_v55 = vmul.f32 %v592_v43, %v101_v54 }
 0x114   :  { %v113_v56 = vadd.f32 %v593_v47, %v107_v55  ;;  %v594_v55 = vld [vmem:[%s916_s6] ss:$0 sm:$0xff] }
 0x116   :  { %573 = vmatmul.msk.f32.gmra.mxu3 %vm50_vm0, %v113_v56  ;;  %v151_v57 = vrot.slane %v113_v56, 7 }
 0x118   :  { %v153_v58 = vsel %vm152_vm8, %v151_v57, %v112_v51 }
 0x119   :  { %574 = vmatmul.msk.f32.vlgmr.msra.gmra.mxu1 %vm50_vm0, %v153_v58 }
 0x191   :  { %v141_v59 = vpop.f32.mrf.mxu3 }
 0x192   :  { %575 = vmatpush.xpose.msk.msra.mxu2 %vm50_vm0, %v141_v59 }
 0x196   :  { %v173_v60 = vpop.f32.mrf.mxu1 }
 0x197   :  { %v177_v61 = vmul.f32 0.35355338, %v173_v60 }
 0x199   :  { %v179_v63 = vrot.slane %v177_v61, 1  ;;  %v180_v1 = vperm.slane %v177_v61, 0  ;;  %v144_v3 = vpop.f32.mrf.mxu3 }
 0x19a   :  { %577 = vmatpush.xpose.msk.msrb.mxu3 %vm50_vm0, %v144_v3  ;;  %v587_v12 = vpack.i.bf16 %v144_v3, %v141_v59 }
 0x19b   :  { %v181_v4 = vperm.slane %v179_v63, 0  ;;  %v184_v5 = vmul.f32 %v180_v1, %v783_v62 }
 0x19d   :  { %v185_v6 = vmul.f32 %v181_v4, %v783_v62  ;;  %576 = vmatmul.msk.f32.vlgmr.msra.gmra.mxu2 %vm50_vm0, %v184_v5 }
 0x19f   :  { %578 = vmatmul.msk.f32.vlgmr.msrb.gmra.mxu3 %vm50_vm0, %v185_v6 }
 0x220   :  { %v209_v7 = vpop.f32.mrf.mxu2 }
 0x221   :  { %v239_v8 = vsel %vm238_vm9, %v209_v7, -inf }
 0x222   :  { %240 = vmax.xlane.f32.xlu2 %v239_v8  ;;  %v235_v9 = vpop.f32.mrf.mxu3 }
 0x223   :  { %v242_v11 = vsel %vm238_vm9, %v235_v9, -inf }
 0x22a   :  { %243 = vmax.xlane.f32.xlu2 %v242_v11  ;;  %v429_v11 = vld [vmem:[%s919_s9 + $0x18] sm:$0xff] }
 0x242   :  { %588 = vrot.lane.b32.xlu2 %v587_v12, %s644_s13  ;;  %v428_v12 = vld [vmem:[%s919_s9 + $0x10] sm:$0xff] }
 0x295   :  { %v241_v13 = vpop.xlane.xlu2 %240 }
 0x296   :  { %v245_v14 = vsub.f32 %v209_v7, %v241_v13  ;;  %v427_v13 = vld [vmem:[%s919_s9 + $0x8] sm:$0xff] }
 0x298   :  { %v247_v15 = vmul.f32 1.442695, %v245_v14  ;;  %v426_v14 = vld [vmem:[%s919_s9] sm:$0xff] }
 0x29a   :  { %605 = vpow2.f32 %v247_v15 }
 0x29d   :  { %v244_v16 = vpop.xlane.xlu2 %243 }
 0x29e   :  { %v246_v17 = vsub.f32 %v235_v9, %v244_v16 }
 0x2a0   :  { %v606_v18 = vpop.eup %605  ;;  %v249_v19 = vmul.f32 1.442695, %v246_v17 }
 0x2a1   :  { %v251_v20 = vsel %vm238_vm9, %v606_v18, 0.0 }
 0x2a2   :  { %607 = vpow2.f32 %v249_v19  ;;  %252 = vadd.xlane.f32.xlu0 %v251_v20 }
 0x2a5   :  { %v589_v21 = vpop.permute.xlu2 %588 }
 0x2a6   :  { %v591_v22 = vunpack.i.h.bf16 %v589_v21  ;;  %v590_v23 = vunpack.i.l.bf16 %v589_v21 }
 0x2a8   :  { %v608_v24 = vpop.eup %607  ;;  %283 = vmatpush.msrb.mxu2 %v590_v23  ;;  %309 = vmatpush.msra.mxu3 %v591_v22 }
 0x2a9   :  { %v254_v25 = vsel %vm238_vm9, %v608_v24, 0.0 }
 0x2aa   :  { %255 = vadd.xlane.f32.xlu1 %v254_v25  ;;  %452 = vmatpush.msra.mxu2 %v429_v11  ;;  %v595_v25 = vld [vmem:[%s917_s7] ss:$0 sm:$0xff] }
 0x2ac   :  { %453 = vmatpush.msra.mxu2 %v428_v12 }
 0x2ae   :  { %454 = vmatpush.msra.mxu2 %v427_v13 }
 0x2b0   :  { %455 = vmatpush.msra.mxu2 %v426_v14 }
 0x315   :  { %v253_v26 = vpop.xlane.xlu0 %252 }
 0x316   :  { %609 = vrcp.f32 %v253_v26 }
 0x31c   :  { %v610_v27 = vpop.eup %609 }
 0x31d   :  { %v256_v28 = vpop.xlane.xlu1 %255  ;;  %v259_v29 = vmul.f32 %v610_v27, %v606_v18 }
 0x31e   :  { %611 = vrcp.f32 %v256_v28 }
 0x31f   :  { %579 = vmatmul.msk.f32.vlgmr.msrb.gmra.mxu2 %vm264_vm10, %v259_v29 }
 0x324   :  { %v612_v30 = vpop.eup %611 }
 0x325   :  { %v260_v31 = vmul.f32 %v612_v30, %v608_v24  ;;  %v596_v30 = vld [vmem:[%s918_s8] ss:$0 sm:$0xff] }
 0x327   :  { %580 = vmatmul.msk.f32.vlgmr.msra.gmra.mxu3 %vm264_vm10, %v260_v31 }
 0x3a2   :  { %v285_v36 = vpop.f32.mrf.mxu2 }
 0x3a3   :  { %v314_v37 = vmul.f32 %v285_v36, %v783_v62  ;;  %v518_v36 = vld [vmem:[%s921_s11 + $0x70] sm:$0xff] }
 0x3a4   :  { %525 = vmatpush.msra.mxu0 %v518_v36 }
 0x3a5   :  { %v317_v38 = vsel %vm316_vm11, %v314_v37, 0.0  ;;  %v517_v37 = vld [vmem:[%s921_s11 + $0x68] sm:$0xff] }
 0x3a6   :  { %v318_v39 = vrot.slane %v317_v38, 4  ;;  %526 = vmatpush.msra.mxu0 %v517_v37 }
 0x3a8   :  { %v319_v40 = vadd.f32 %v318_v39, %v317_v38  ;;  %v516_v38 = vld [vmem:[%s921_s11 + $0x60] sm:$0xff] }
 0x3a9   :  { %v597_v39 = vld [vmem:[%s920_s10] ss:$0 sm:$0xff]  ;;  %527 = vmatpush.msra.mxu0 %v516_v38 }
 0x3aa   :  { %v311_v41 = vpop.f32.mrf.mxu3  ;;  %v320_v43 = vrot.slane %v319_v40, 2 }
 0x3ab   :  { %v315_v42 = vmul.f32 %v311_v41, %v783_v62  ;;  %v514_v41 = vld [vmem:[%s921_s11 + $0x50] sm:$0xff] }
 0x3ac   :  { %v321_v46 = vadd.f32 %v320_v43, %v319_v40  ;;  %v515_v40 = vld [vmem:[%s921_s11 + $0x58] sm:$0xff]  ;;  %v513_v43 = vld [vmem:[%s921_s11 + $0x48] sm:$0xff] }
 0x3ad   :  { %v324_v44 = vsel %vm316_vm11, %v315_v42, 0.0  ;;  %528 = vmatpush.msra.mxu0 %v515_v40 }
 0x3ae   :  { %v325_v45 = vrot.slane %v324_v44, 4  ;;  %v322_v49 = vrot.slane %v321_v46, 1 }
 0x3af   :  { %529 = vmatpush.msra.mxu0 %v514_v41 }
 0x3b0   :  { %v326_v47 = vadd.f32 %v325_v45, %v324_v44  ;;  %v323_v52 = vadd.f32 %v322_v49, %v321_v46  ;;  %v512_v45 = vld [vmem:[%s921_s11 + $0x40] sm:$0xff]  ;;  %v510_v49 = vld [vmem:[%s921_s11 + $0x30] sm:$0xff] }
 0x3b1   :  { %530 = vmatpush.msra.mxu0 %v513_v43 }
 0x3b2   :  { %v327_v48 = vrot.slane %v326_v47, 2 }
 0x3b3   :  { %531 = vmatpush.msra.mxu0 %v512_v45 }
 0x3b4   :  { %v328_v50 = vadd.f32 %v327_v48, %v326_v47  ;;  %v511_v47 = vld [vmem:[%s921_s11 + $0x38] sm:$0xff] }
 0x3b5   :  { %532 = vmatpush.msra.mxu0 %v511_v47 }
 0x3b6   :  { %v329_v51 = vrot.slane %v328_v50, 1 }
 0x3b7   :  { %533 = vmatpush.msra.mxu0 %v510_v49 }
 0x3b8   :  { %v330_v53 = vadd.f32 %v329_v51, %v328_v50  ;;  %v509_v51 = vld [vmem:[%s921_s11 + $0x28] sm:$0xff] }
 0x3b9   :  { %534 = vmatpush.msra.mxu0 %v509_v51 }
 0x3ba   :  { %v341_v54 = vsel %vm152_vm8, %v330_v53, %v323_v52 }
 0x3bb   :  { %581 = vmatmul.msk.f32.vlgmr.msrb.gmra.mxu1 %vm50_vm0, %v341_v54  ;;  %v508_v54 = vld [vmem:[%s921_s11 + $0x20] sm:$0xff] }
 0x3bc   :  { %535 = vmatpush.msra.mxu0 %v508_v54 }
 0x438   :  { %v361_v56 = vpop.f32.mrf.mxu1 }
 0x439   :  { %v362_v57 = vadd.f32 %v594_v55, %v361_v56 }
 0x43b   :  { %v365_v58 = vrot.slane %v362_v57, 1  ;;  %v817_v60 = vadd.f32 %v362_v57, %v724_v0  ;;  %v507_v57 = vld [vmem:[%s921_s11 + $0x18] sm:$0xff] }
 0x43c   :  { %536 = vmatpush.msra.mxu0 %v507_v57 }
 0x43d   :  { %v814_v59 = vadd.f32 %v365_v58, %v731_v2 }
 0x43f   :  { %v372_v61 = vrot.slane %v814_v59, 7 }
 0x441   :  { %v373_v62 = vsel %vm152_vm8, %v372_v61, %v817_v60 }
 0x442   :  { %v376_v63 = vsel %vm375_vm12, %v373_v62, 0.0  ;;  %v506_v62 = vld [vmem:[%s921_s11 + $0x10] sm:$0xff] }
 0x443   :  { %377 = vadd.xlane.f32.xlu0 %v376_v63  ;;  %537 = vmatpush.msra.mxu0 %v506_v62 }
 0x4b6   :  { %v378_v1 = vpop.xlane.xlu0 %377 }
 0x4b7   :  { %v379_v3 = vmul.f32 %v378_v1, %v735_v10 }
 0x4b9   :  { %v381_v4 = vrot.slane %v379_v3, 1  ;;  %v384_v5 = vsub.f32 %v817_v60, %v379_v3  ;;  %v505_v3 = vld [vmem:[%s921_s11 + $0x8] sm:$0xff] }
 0x4ba   :  { %538 = vmatpush.msra.mxu0 %v505_v3 }
 0x4bb   :  { %v385_v2 = vsub.f32 %v814_v59, %v381_v4  ;;  %v386_v0 = vmul.f32 %v384_v5, %v384_v5 }
 0x4bd   :  { %v387_v6 = vmul.f32 %v385_v2, %v385_v2 }
 0x4bf   :  { %v390_v7 = vrot.slane %v387_v6, 7 }
 0x4c1   :  { %v391_v8 = vsel %vm152_vm8, %v390_v7, %v386_v0 }
 0x4c2   :  { %v393_v9 = vsel %vm375_vm12, %v391_v8, 0.0 }
 0x4c3   :  { %394 = vadd.xlane.f32.xlu1 %v393_v9 }
 0x536   :  { %v395_v15 = vpop.xlane.xlu1 %394 }
 0x537   :  { %v396_v16 = vmul.f32 %v395_v15, %v735_v10 }
 0x539   :  { %v397_v17 = vadd.f32 1e-05, %v396_v16 }
 0x53b   :  { %613 = vrsqrt.f32 %v397_v17  ;;  %vm404_vm14 = vweird.f32 %v397_v17 }
 0x541   :  { %v614_v18 = vpop.eup %613 }
 0x542   :  { %v399_v19 = vmul.f32 %v614_v18, %v397_v17  ;;  %vm405_vm13 = vweird.f32 %v614_v18 }
 0x543   :  { %vm406_vm15 = vmor %vm404_vm14, %vm405_vm13 }
 0x544   :  { %v400_v20 = vmul.f32 %v614_v18, %v399_v19 }
 0x546   :  { %v401_v21 = vmul.f32 0.5, %v400_v20 }
 0x548   :  { %v402_v22 = vsub.f32 1.5, %v401_v21 }
 0x54a   :  { %v403_v23 = vmul.f32 %v614_v18, %v402_v22 }
 0x54c   :  { %v407_v24 = vsel %vm406_vm15, %v614_v18, %v403_v23 }
 0x54d   :  { %v409_v26 = vrot.slane %v407_v24, 1  ;;  %v412_v27 = vmul.f32 %v407_v24, %v384_v5  ;;  %v504_v5 = vld [vmem:[%s921_s11] sm:$0xff] }
 0x54e   :  { %539 = vmatpush.msra.mxu0 %v504_v5 }
 0x54f   :  { %v413_v28 = vmul.f32 %v409_v26, %v385_v2  ;;  %v418_v10 = vmul.f32 %v595_v25, %v412_v27 }
 0x551   :  { %v419_v29 = vmul.f32 %v595_v25, %v413_v28  ;;  %v424_v32 = vadd.f32 %v596_v30, %v418_v10 }
 0x553   :  { %v425_v31 = vadd.f32 %v596_v30, %v419_v29 }
 0x555   :  { %v436_v33 = vrot.slane %v425_v31, 7  ;;  %v598_v31 = vld [vmem:[%s922_s12] ss:$0 sm:$0xff] }
 0x557   :  { %v437_v34 = vsel %vm152_vm8, %v436_v33, %v424_v32 }
 0x558   :  { %582 = vmatmul.msk.f32.vlgmr.msra.gmra.mxu2 %vm50_vm0, %v437_v34 }
 0x5db   :  { %v457_v42 = vpop.f32.mrf.mxu2 }
 0x5dc   :  { %v458_v44 = vadd.f32 %v597_v39, %v457_v42 }
 0x5de   :  { %v461_v46 = vmul.f32 0.70710677, %v458_v44  ;;  %v460_v10 = vmul.f32 0.5, %v458_v44 }
 0x5e0   :  { %v462_v48 = vmul.f32 %v461_v46, %v461_v46 }
 0x5e2   :  { %v463_v50 = vmin.f32 %v462_v48, 16.0 }
 0x5e4   :  { %v464_v52 = vmul.f32 2.1237322e-06, %v463_v50  ;;  %v475_v53 = vmul.f32 3.8918573e-05, %v463_v50 }
 0x5e6   :  { %v465_v55 = vadd.f32 0.00028619796, %v464_v52  ;;  %v476_v56 = vadd.f32 0.001143296, %v475_v53 }
 0x5e8   :  { %v466_v58 = vmul.f32 %v465_v55, %v463_v50  ;;  %v477_v61 = vmul.f32 %v476_v56, %v463_v50 }
 0x5ea   :  { %v478_v63 = vadd.f32 0.014752088, %v477_v61  ;;  %v467_v1 = vadd.f32 0.0036580483, %v466_v58 }
 0x5ec   :  { %v479_v4 = vmul.f32 %v478_v63, %v463_v50  ;;  %v468_v6 = vmul.f32 %v467_v1, %v463_v50 }
 0x5ee   :  { %v480_v2 = vadd.f32 0.112945676, %v479_v4  ;;  %v469_v8 = vadd.f32 0.05243302, %v468_v6 }
 0x5f0   :  { %v481_v0 = vmul.f32 %v480_v2, %v463_v50  ;;  %v470_v12 = vmul.f32 %v469_v8, %v463_v50 }
 0x5f2   :  { %v482_v7 = vadd.f32 0.4994258, %v481_v0  ;;  %v471_v13 = vadd.f32 0.18741608, %v470_v12 }
 0x5f4   :  { %v483_v9 = vmul.f32 %v482_v7, %v463_v50  ;;  %v472_v15 = vmul.f32 %v471_v13, %v463_v50 }
 0x5f6   :  { %v484_v11 = vadd.f32 1.0, %v483_v9  ;;  %v473_v19 = vadd.f32 1.1283791, %v472_v15 }
 0x5f8   :  { %615 = vrcp.f32 %v484_v11  ;;  %v496_v18 = vand.u32 2147483648, %v484_v11  ;;  %v494_v21 = vand.u32 2147483647, %v484_v11  ;;  %vm490_vm1 = vweird.f32 %v484_v11 }
 0x5f9   :  { %v474_v24 = vmul.f32 %v473_v19, %v461_v46 }
 0x5fa   :  { %v497_v23 = vor.u32 1.1754944e-38, %v496_v18  ;;  %vm495_vm3 = vcmp.eq.f32.partialorder %v494_v21, 8.507059e+37 }
 0x5fe   :  { %v616_v14 = vpop.eup %615 }
 0x5ff   :  { %v486_v16 = vmul.f32 %v616_v14, %v484_v11  ;;  %vm491_vm0 = vweird.f32 %v616_v14 }
 0x600   :  { %vm492_vm2 = vmor %vm490_vm1, %vm491_vm0 }
 0x601   :  { %v487_v17 = vsub.f32 1.0, %v486_v16 }
 0x603   :  { %v488_v20 = vmul.f32 %v616_v14, %v487_v17 }
 0x605   :  { %v489_v22 = vadd.f32 %v616_v14, %v488_v20 }
 0x607   :  { %v493_v25 = vsel %vm492_vm2, %v616_v14, %v489_v22 }
 0x608   :  { %v498_v26 = vsel %vm495_vm3, %v497_v23, %v493_v25 }
 0x609   :  { %v499_v27 = vmul.f32 %v498_v26, %v474_v24 }
 0x60b   :  { %v583_v28 = vclamps-f32 %v499_v27, 1.0 }
 0x60d   :  { %v502_v29 = vadd.f32 1.0, %v583_v28 }
 0x60f   :  { %v503_v30 = vmul.f32 %v502_v29, %v460_v10 }
 0x611   :  { %540 = vmatmul.f32.vlgmr.msra.gmra.mxu0 %v503_v30 }
 0x68e   :  { %v541_v32 = vpop.f32.mrf.mxu0 }
 0x68f   :  { %v542_v33 = vadd.f32 %v598_v31, %v541_v32 }
 0x691   :  { %v545_v34 = vrot.slane %v542_v33, 1  ;;  %v548_v36 = vadd.f32 %v542_v33, %v817_v60 }
 0x693   :  { %v549_v35 = vadd.f32 %v545_v34, %v814_v59 }
 0x695   :  { %v552_v37 = vrot.slane %v549_v35, 7 }
 0x697   :  { %v553_v38 = vsel %vm152_vm8, %v552_v37, %v548_v36 }
 0x698   :  { %555 = vst.msk [vmem:[#allocation2] sm:$0x3] %vm375_vm12, %v553_v38 }
 0x699   :  { %566 = dma.vmem_to_hbm [thread:$0]  %s562_s20, 32, %s564_s23, [#allocation3]  }
 0x69a   :  { %641 = dma.done.wait [#allocation3], 32  }
 0x69b   :  { %642 = vsyncadd [#allocation3], 4294967264 }
 0x69c   :  { %571 = vsyncpa [#allocation3], 1 }

</bundles_post_ra>
